<compile_context>
chip_gen: v6e
topology: v6e:2x2x1
jax: 0.10.0
libtpu: 0.0.40
codegen_flags: <defaults>
</compile_context>

<pallas_src>
import functools

import jax
import jax.numpy as jnp
from jax import lax
from jax.experimental import pallas as pl
from jax.experimental.pallas import tpu as pltpu


def _round_up(n, m):
    return ((n + m - 1) // m) * m


def _gmm_kernel(x_ref, w_ref, b_ref, vf_ref,
                means_ref, var_ref, logw_ref, acc_ref,
                *, co, co_pad, compute_dtype):
    """Fused matmul (accumulated over the K grid axis) + per-region epilogues.

    Fused column layout (all region starts 128-lane aligned):
        [0, co)                      means           (identity)
        [co_pad, co_pad + co)        variances       (exp + vfloor)
        [2*co_pad, 2*co_pad + C_pad) mixture logits  (log-softmax; pad lanes
                                                      carry bias -1e30)
    """
    k = pl.program_id(1)

    @pl.when(k == 0)
    def _():
        acc_ref[...] = jnp.zeros_like(acc_ref)

    # In-kernel cast (bf16 path): keeps HBM traffic for x at a single f32 read.
    x = x_ref[...].astype(compute_dtype)
    acc_ref[...] += jnp.dot(x, w_ref[...], preferred_element_type=jnp.float32)

    @pl.when(k == pl.num_programs(1) - 1)
    def _():
        y = acc_ref[...] + b_ref[...]                       # (TB, Nf) f32
        c = logw_ref.shape[1]

        # means: straight copy of the first co lanes
        means_ref[...] = y[:, :co]

        # variances: exp + vfloor, restricted to the variance lanes only
        var_ref[...] = jnp.exp(y[:, co_pad:co_pad + co]) + vf_ref[...]

        # mixture log-weights: stable log-softmax over the 128-aligned logit
        # block; padded lanes have bias -1e30 so they never win the max and
        # exp(pad - max) underflows to 0.
        z = y[:, 2 * co_pad:]
        mx = jnp.max(z, axis=1, keepdims=True)
        shifted = z - mx
        lse = jnp.log(jnp.sum(jnp.exp(shifted), axis=1, keepdims=True))
        logw_ref[...] = (shifted - lse)[:, :c]


def pack_params(params, n_categories, output_size, compute_dtype=jnp.float32):
    """One-time packing of the three Linears into one lane-aligned fused weight."""
    C, O = n_categories, output_size
    CO = C * O
    D = params["means_w"].shape[0]
    CO_pad = _round_up(CO, 128)
    C_pad = _round_up(C, 128)
    Nf = 2 * CO_pad + C_pad

    def col_pad(w, width):
        return jnp.pad(w, ((0, 0), (0, width - w.shape[1])))

    w_fused = jnp.concatenate(
        [col_pad(params["means_w"], CO_pad),
         col_pad(params["variances_w"], CO_pad),
         col_pad(params["weights_w"], C_pad)], axis=1).astype(compute_dtype)

    b_fused = jnp.concatenate(
        [jnp.pad(params["means_b"], (0, CO_pad - CO)),
         jnp.pad(params["variances_b"], (0, CO_pad - CO)),
         jnp.pad(params["weights_b"], (0, C_pad - C), constant_values=-1e30)],
    ).reshape(1, Nf).astype(jnp.float32)

    vfloor_row = jnp.tile(params["vfloor"].astype(jnp.float32), (C,)).reshape(1, CO)

    return {"w_fused": w_fused, "b_fused": b_fused, "vfloor_row": vfloor_row,
            "n_categories": C, "output_size": O,
            "co": CO, "co_pad": CO_pad, "c_pad": C_pad, "fused_width": Nf}


def gaussian_mixtures_forward(x, packed):
    """Returns (log_weights (B,C), means (B,C,O), variances (B,C,O))."""
    C, O = packed["n_categories"], packed["output_size"]
    CO, CO_pad, C_pad, Nf = (packed["co"], packed["co_pad"],
                             packed["c_pad"], packed["fused_width"])
    B, D = x.shape
    wdt = packed["w_fused"].dtype
    wbytes = jnp.dtype(wdt).itemsize
    xbytes = jnp.dtype(x.dtype).itemsize

    # VMEM capacity: 128 MiB on v5e/v6e, 64 MiB per TC on v7x.  Keep ~25%
    # headroom for compiler-internal scratch.
    try:
        vmem_cap = int(getattr(pltpu.get_tpu_info(), "vmem_capacity_bytes",
                               64 * 1024 * 1024))
    except Exception:  # conservative fallback (v7x per-TC size)
        vmem_cap = 64 * 1024 * 1024
    cap = (vmem_cap * 3) // 4

    # K-tiling over D only when the resident weight (with its implicit 2-deep
    # pipeline buffers) would eat >1/3 of VMEM; requires 128 | D so every K
    # tile is full (no garbage accumulated into real rows).
    TD, n_k = D, 1
    if 2 * D * Nf * wbytes > cap // 3 and D % 128 == 0:
        td = max(128, ((cap // 3) // (2 * Nf * wbytes)) // 128 * 128)
        while D % td:
            td -= 128
        TD, n_k = td, D // td

    # Resident operands (weight/bias/vfloor), counting default double-buffering
    # and the 8-sublane VMEM padding of the (1, .) rows.
    fixed = 2 * TD * Nf * wbytes + 2 * 8 * Nf * 4 + 2 * 8 * CO * 4

    def tile_cost(tb):
        return (2 * tb * TD * xbytes              # x tiles (double-buffered)
                + 2 * tb * (2 * CO + C_pad) * 4   # three output tiles
                + 3 * tb * Nf * 4)                # f32 accumulator + epilogue temps

    # Big batch tiles amortize per-step overhead (~0.35 us); shrink only if the
    # per-tile VMEM cost would blow the budget.
    TB = min(512, _round_up(B, 8))
    while TB > 8 and fixed + tile_cost(TB) > cap:
        TB = max(8, (TB // 2) // 8 * 8)

    vmem_limit = int(min(cap, max(32 << 20, fixed + tile_cost(TB) + (4 << 20))))

    kernel = functools.partial(_gmm_kernel, co=CO, co_pad=CO_pad,
                               compute_dtype=wdt)

    # Ragged batch tail handled by Pallas masked boundary blocks (no jnp.pad
    # copy of x); garbage tail rows never reach the outputs.
    grid = (pl.cdiv(B, TB), n_k)

    means2d, var2d, logw = pl.pallas_call(
        kernel,
        out_shape=(jax.ShapeDtypeStruct((B, CO), jnp.float32),
                   jax.ShapeDtypeStruct((B, CO), jnp.float32),
                   jax.ShapeDtypeStruct((B, C), jnp.float32)),
        grid_spec=pltpu.PrefetchScalarGridSpec(
            num_scalar_prefetch=0,
            grid=grid,
            in_specs=[
                pl.BlockSpec((TB, TD), lambda i, k: (i, k)),   # x tile (pipelined)
                pl.BlockSpec((TD, Nf), lambda i, k: (k, 0)),   # fused weight
                pl.BlockSpec((1, Nf), lambda i, k: (0, 0)),    # fused bias (resident)
                pl.BlockSpec((1, CO), lambda i, k: (0, 0)),    # vfloor row (resident)
            ],
            out_specs=(
                pl.BlockSpec((TB, CO), lambda i, k: (i, 0)),   # means
                pl.BlockSpec((TB, CO), lambda i, k: (i, 0)),   # variances
                pl.BlockSpec((TB, C), lambda i, k: (i, 0)),    # log-weights
            ),
            scratch_shapes=[pltpu.VMEM((TB, Nf), jnp.float32)],
        ),
        compiler_params=pltpu.CompilerParams(
            dimension_semantics=("parallel", "arbitrary"),
            vmem_limit_bytes=vmem_limit),
    )(x, packed["w_fused"], packed["b_fused"], packed["vfloor_row"])

    # (B, C*O) -> (B, C, O) is a contiguous, copy-free reshape.
    return logw, means2d.reshape(B, C, O), var2d.reshape(B, C, O)


def init_params(key, input_size, n_categories, output_size):
    """Deterministic init mimicking PyTorch nn.Linear default (weights stored (D, out))."""
    D, C, O = input_size, n_categories, output_size
    CO = C * O
    bound = 1.0 / (D ** 0.5)
    ks = jax.random.split(key, 6)
    u = lambda k, shape: jax.random.uniform(k, shape, jnp.float32, -bound, bound)
    return {
        "means_w": u(ks[0], (D, CO)),
        "means_b": u(ks[1], (CO,)),
        "variances_w": u(ks[2], (D, CO)),
        "variances_b": u(ks[3], (CO,)),
        "weights_w": u(ks[4], (D, C)),
        "weights_b": u(ks[5], (C,)),
        "vfloor": jnp.full((O,), 0.01, dtype=jnp.float32),
    }


def reference_forward(x, params, C, O):
    logits = x @ params["weights_w"] + params["weights_b"]
    logw = jax.nn.log_softmax(logits, axis=1)
    means = (x @ params["means_w"] + params["means_b"]).reshape(-1, C, O)
    var = (jnp.exp(x @ params["variances_w"] + params["variances_b"]).reshape(-1, C, O)
           + params["vfloor"])
    return logw, means, var


if __name__ == "__main__":
    B, D, C, O = 8, 32, 4, 16
    key = jax.random.PRNGKey(0)
    kx, kp = jax.random.split(key)
    x = jax.random.normal(kx, (B, D), dtype=jnp.float32)
    params = init_params(kp, D, C, O)

    r_logw, r_means, r_var = reference_forward(x, params, C, O)

    # f32 path: exact parity with the plain-JAX reference.
    packed = pack_params(params, C, O, compute_dtype=jnp.float32)
    logw, means, variances = gaussian_mixtures_forward(x, packed)
    jax.block_until_ready((logw, means, variances))
    assert logw.shape == (B, C) and means.shape == (B, C, O) and variances.shape == (B, C, O)
    assert jnp.allclose(logw, r_logw, atol=1e-5), "logw mismatch (f32)"
    assert jnp.allclose(means, r_means, atol=1e-5), "means mismatch (f32)"
    assert jnp.allclose(variances, r_var, atol=1e-5), "variances mismatch (f32)"

    # bf16-weight path (recommended on v6e/v7x): x is cast inside the kernel,
    # accumulation + epilogue stay f32; tolerance relaxed accordingly.
    packed_bf16 = pack_params(params, C, O, compute_dtype=jnp.bfloat16)
    logw_b, means_b, var_b = gaussian_mixtures_forward(x, packed_bf16)
    jax.block_until_ready((logw_b, means_b, var_b))
    assert jnp.allclose(logw_b, r_logw, atol=1e-1, rtol=1e-1), "logw mismatch (bf16)"
    assert jnp.allclose(means_b, r_means, atol=1e-1, rtol=1e-1), "means mismatch (bf16)"
    assert jnp.allclose(var_b, r_var, atol=1e-1, rtol=1e-1), "variances mismatch (bf16)"

    print("KERNEL_OK")
</pallas_src>

<mosaic_0001>
module attributes {stable_mosaic.version = 11 : i64} {
  func.func @_gmm_kernel(%arg0: i32, %arg1: i32, %arg2: memref<8x32xf32, #tpu.memory_space<vmem>>, %arg3: memref<32x384xf32, #tpu.memory_space<vmem>>, %arg4: memref<1x384xf32, #tpu.memory_space<vmem>>, %arg5: memref<1x64xf32, #tpu.memory_space<vmem>>, %arg6: memref<8x64xf32, #tpu.memory_space<vmem>>, %arg7: memref<8x64xf32, #tpu.memory_space<vmem>>, %arg8: memref<8x4xf32, #tpu.memory_space<vmem>>, %arg9: memref<8x384xf32, #tpu.memory_space<vmem>>) attributes {dimension_semantics = [#tpu.dimension_semantics<parallel>, #tpu.dimension_semantics<arbitrary>], iteration_bounds = array<i64: 1, 1>, scalar_prefetch = 0 : i64, scratch_operands = 1 : i64, tpu.core_type = #tpu.core_type<tc>, window_params = [{transform_indices = @transform_0, window_bounds = array<i64: 8, 32>}, {transform_indices = @transform_1, window_bounds = array<i64: 32, 384>}, {pipeline_mode = #tpu.pipeline_mode<synchronous>, transform_indices = @transform_2, window_bounds = array<i64: 1, 384>}, {pipeline_mode = #tpu.pipeline_mode<synchronous>, transform_indices = @transform_3, window_bounds = array<i64: 1, 64>}, {transform_indices = @transform_4, window_bounds = array<i64: 8, 64>}, {transform_indices = @transform_5, window_bounds = array<i64: 8, 64>}, {transform_indices = @transform_6, window_bounds = array<i64: 8, 4>}]} {
    %c0_i32 = arith.constant 0 : i32
    %0 = arith.cmpi eq, %arg1, %c0_i32 : i32
    %1 = arith.extui %0 : i1 to i32
    %c0_i32_0 = arith.constant 0 : i32
    %2 = arith.cmpi ne, %1, %c0_i32_0 : i32
    scf.if %2 {
      %cst_10 = arith.constant 0.000000e+00 : f32
      %12 = vector.broadcast %cst_10 : f32 to vector<8x384xf32>
      %c0_11 = arith.constant 0 : index
      %c0_12 = arith.constant 0 : index
      %13 = vector.load %arg9[%c0_11, %c0_12] : memref<8x384xf32, #tpu.memory_space<vmem>>, vector<8x384xf32>
      tpu.vector_store %arg9[%c0_11, %c0_12], %12 {strides = array<i32>} : memref<8x384xf32, #tpu.memory_space<vmem>>, vector<8x384xf32>,
    } else {
    }
    %c0 = arith.constant 0 : index
    %c0_1 = arith.constant 0 : index
    %3 = vector.load %arg2[%c0, %c0_1] : memref<8x32xf32, #tpu.memory_space<vmem>>, vector<8x32xf32>
    %c0_2 = arith.constant 0 : index
    %c0_3 = arith.constant 0 : index
    %4 = vector.load %arg9[%c0_2, %c0_3] : memref<8x384xf32, #tpu.memory_space<vmem>>, vector<8x384xf32>
    %c0_4 = arith.constant 0 : index
    %c0_5 = arith.constant 0 : index
    %5 = vector.load %arg3[%c0_4, %c0_5] : memref<32x384xf32, #tpu.memory_space<vmem>>, vector<32x384xf32>
    %cst = arith.constant dense<0.000000e+00> : vector<8x384xf32>
    %6 = tpu.matmul %3, %5, %cst {dimension_numbers = #tpu.dot_dimension_numbers<[1], [0], [0], [1], [0, 0, 1, 1], [], []>} : vector<8x32xf32>, vector<32x384xf32>, vector<8x384xf32> -> vector<8x384xf32>
    %7 = arith.addf %4, %6 : vector<8x384xf32>
    %c0_6 = arith.constant 0 : index
    %c0_7 = arith.constant 0 : index
    %8 = vector.load %arg9[%c0_6, %c0_7] : memref<8x384xf32, #tpu.memory_space<vmem>>, vector<8x384xf32>
    tpu.vector_store %arg9[%c0_6, %c0_7], %7 {strides = array<i32>} : memref<8x384xf32, #tpu.memory_space<vmem>>, vector<8x384xf32>,
    %c0_i32_8 = arith.constant 0 : i32
    %9 = arith.cmpi eq, %arg1, %c0_i32_8 : i32
    %10 = arith.extui %9 : i1 to i32
    %c0_i32_9 = arith.constant 0 : i32
    %11 = arith.cmpi ne, %10, %c0_i32_9 : i32
    scf.if %11 {
      %c0_10 = arith.constant 0 : index
      %c0_11 = arith.constant 0 : index
      %12 = vector.load %arg9[%c0_10, %c0_11] : memref<8x384xf32, #tpu.memory_space<vmem>>, vector<8x384xf32>
      %c0_12 = arith.constant 0 : index
      %c0_13 = arith.constant 0 : index
      %13 = vector.load %arg4[%c0_12, %c0_13] : memref<1x384xf32, #tpu.memory_space<vmem>>, vector<1x384xf32>
      %14 = vector.broadcast %13 : vector<1x384xf32> to vector<8x384xf32>
      %15 = arith.addf %12, %14 : vector<8x384xf32>
      %16 = vector.extract_strided_slice %15 {offsets = [0, 0], sizes = [8, 64], strides = [1, 1]} : vector<8x384xf32> to vector<8x64xf32>
      %c0_14 = arith.constant 0 : index
      %c0_15 = arith.constant 0 : index
      %17 = vector.load %arg6[%c0_14, %c0_15] : memref<8x64xf32, #tpu.memory_space<vmem>>, vector<8x64xf32>
      tpu.vector_store %arg6[%c0_14, %c0_15], %16 {strides = array<i32>} : memref<8x64xf32, #tpu.memory_space<vmem>>, vector<8x64xf32>,
      %18 = vector.extract_strided_slice %15 {offsets = [0, 128], sizes = [8, 64], strides = [1, 1]} : vector<8x384xf32> to vector<8x64xf32>
      %19 = math.exp %18 : vector<8x64xf32>
      %c0_16 = arith.constant 0 : index
      %c0_17 = arith.constant 0 : index
      %20 = vector.load %arg5[%c0_16, %c0_17] : memref<1x64xf32, #tpu.memory_space<vmem>>, vector<1x64xf32>
      %21 = vector.broadcast %20 : vector<1x64xf32> to vector<8x64xf32>
      %22 = arith.addf %19, %21 : vector<8x64xf32>
      %c0_18 = arith.constant 0 : index
      %c0_19 = arith.constant 0 : index
      %23 = vector.load %arg7[%c0_18, %c0_19] : memref<8x64xf32, #tpu.memory_space<vmem>>, vector<8x64xf32>
      tpu.vector_store %arg7[%c0_18, %c0_19], %22 {strides = array<i32>} : memref<8x64xf32, #tpu.memory_space<vmem>>, vector<8x64xf32>,
      %24 = vector.extract_strided_slice %15 {offsets = [0, 256], sizes = [8, 128], strides = [1, 1]} : vector<8x384xf32> to vector<8x128xf32>
      %cst_20 = arith.constant dense<0xFF800000> : vector<8xf32>
      %25 = vector.multi_reduction <maximumf>, %24, %cst_20 [1] : vector<8x128xf32> to vector<8xf32>
      %26 = vector.shape_cast %25 : vector<8xf32> to vector<8x1xf32>
      %27 = vector.broadcast %26 : vector<8x1xf32> to vector<8x128xf32>
      %28 = arith.subf %24, %27 : vector<8x128xf32>
      %29 = math.exp %28 : vector<8x128xf32>
      %cst_21 = arith.constant dense<0.000000e+00> : vector<8xf32>
      %30 = vector.multi_reduction <add>, %29, %cst_21 [1] : vector<8x128xf32> to vector<8xf32>
      %31 = vector.shape_cast %30 : vector<8xf32> to vector<8x1xf32>
      %32 = math.log %31 : vector<8x1xf32>
      %33 = vector.broadcast %32 : vector<8x1xf32> to vector<8x128xf32>
      %34 = arith.subf %28, %33 : vector<8x128xf32>
      %35 = vector.extract_strided_slice %34 {offsets = [0, 0], sizes = [8, 4], strides = [1, 1]} : vector<8x128xf32> to vector<8x4xf32>
      %c0_22 = arith.constant 0 : index
      %c0_23 = arith.constant 0 : index
      %36 = vector.load %arg8[%c0_22, %c0_23] : memref<8x4xf32, #tpu.memory_space<vmem>>, vector<8x4xf32>
      tpu.vector_store %arg8[%c0_22, %c0_23], %35 {strides = array<i32>} : memref<8x4xf32, #tpu.memory_space<vmem>>, vector<8x4xf32>,
    } else {
    }
    return
  }
  func.func @transform_0(%arg0: i32, %arg1: i32) -> (i32, i32) {
    %c0_i32 = arith.constant 0 : i32
    return %arg0, %arg1 : i32, i32
  }
  func.func @transform_1(%arg0: i32, %arg1: i32) -> (i32, i32) {
    %c0_i32 = arith.constant 0 : i32
    %c0_i32_0 = arith.constant 0 : i32
    return %arg1, %c0_i32 : i32, i32
  }
  func.func @transform_2(%arg0: i32, %arg1: i32) -> (i32, i32) {
    %c0_i32 = arith.constant 0 : i32
    %c0_i32_0 = arith.constant 0 : i32
    %c0_i32_1 = arith.constant 0 : i32
    return %c0_i32, %c0_i32_0 : i32, i32
  }
  func.func @transform_3(%arg0: i32, %arg1: i32) -> (i32, i32) {
    %c0_i32 = arith.constant 0 : i32
    %c0_i32_0 = arith.constant 0 : i32
    %c0_i32_1 = arith.constant 0 : i32
    return %c0_i32, %c0_i32_0 : i32, i32
  }
  func.func @transform_4(%arg0: i32, %arg1: i32) -> (i32, i32) {
    %c0_i32 = arith.constant 0 : i32
    %c0_i32_0 = arith.constant 0 : i32
    return %arg0, %c0_i32 : i32, i32
  }
  func.func @transform_5(%arg0: i32, %arg1: i32) -> (i32, i32) {
    %c0_i32 = arith.constant 0 : i32
    %c0_i32_0 = arith.constant 0 : i32
    return %arg0, %c0_i32 : i32, i32
  }
  func.func @transform_6(%arg0: i32, %arg1: i32) -> (i32, i32) {
    %c0_i32 = arith.constant 0 : i32
    %c0_i32_0 = arith.constant 0 : i32
    return %arg0, %c0_i32 : i32, i32
  }
}

</mosaic_0001>

<bundles_post_ra>
// kernel: tpu_custom_call.1
= control target key start
LH: loop header
LB: loop body
LE: loop exit
PB: predicated region body
PF: predicated region fallthrough
CT: control target
= control target key end

     0   :  { %12 = vsyncpa [#allocation4], 0  ;;  %s494_s0 = inlined_call_operand.hbm [shape: f32[8,32], index: 0, kind: input, shape index: {}]   ;;  %s495_s1 = inlined_call_operand.hbm [shape: f32[32,384], index: 1, kind: input, shape index: {}]   ;;  %s496_s2 = inlined_call_operand.vmem [shape: f32[1,384], index: 2, kind: input, shape index: {}]   ;;  %s497_s3 = inlined_call_operand.vmem [shape: f32[1,64], index: 3, kind: input, shape index: {}]   ;;  %s498_s4 = inlined_call_operand.hbm [shape: f32[8,64], index: 4, kind: output, shape index: {0}]   ;;  %s499_s5 = inlined_call_operand.hbm [shape: f32[8,64], index: 5, kind: output, shape index: {1}]   ;;  %s500_s6 = inlined_call_operand.vmem [shape: f32[8,4], index: 6, kind: output, shape index: {2}]  }
   0x1   :  { %13 = vsyncpa [#allocation7], 0 }
   0x2   :  { %14 = vsyncpa [#allocation5], 0 }
   0x3   :  { %15 = vsyncpa [#allocation10], 0  ;;  %s428_s21 = smov [#allocation3]   ;;  %s429_s23 = smov [#allocation6]  }
   0x4   :  { %s22_s22 = sshll.u32 %s428_s21, 4  ;;  %s31_s24 = sshll.u32 %s429_s23, 4  ;;  %s23_s22 = int_to_ptr.vmem [resolvable:$true] %s22_s22  ;;  %s32_s24 = int_to_ptr.vmem [resolvable:$true] %s31_s24 }
   0x5   :  { %s348_s25 = scalar_lea.vmem %s23_s22, 128  ;;  %p353_p1 = scmp.lt.s32.totalorder %s23_s22, %s23_s22 }
   0x6   :  { %p349_p0 = scmp.ne.s32.totalorder %s23_s22, %s348_s25  ;;  %p354_p2 = scmp.lt.s32.totalorder %s348_s25, %s348_s25 }
   0x8   :  { %p355_p3 = por %p354_p2, %p353_p1 }
   0xa   :  { %p356_p4 = pnand %p355_p3, %p349_p0 }
   0xc   :  { %359 = shalt.err (!%p356_p4)
}
   0xd   :  { %25 = dma.hbm_to_vmem [thread:$0]  %s494_s0, 128, %s23_s22, [#allocation4]  }
   0xe   :  { %s368_s28 = scalar_lea.vmem %s32_s24, 1536  ;;  %p373_p6 = scmp.lt.s32.totalorder %s32_s24, %s32_s24 }
   0xf   :  { %p369_p5 = scmp.ne.s32.totalorder %s32_s24, %s368_s28  ;;  %p374_p7 = scmp.lt.s32.totalorder %s368_s28, %s368_s28 }
  0x11   :  { %p375_p8 = por %p374_p7, %p373_p6 }
  0x13   :  { %p376_p9 = pnand %p375_p8, %p369_p5 }
  0x15   :  { %379 = shalt.err (!%p376_p9)
}
  0x16   :  { %s430_s29 = smov 384   ;;  %s431_s30 = smov 24  }
  0x17   :  { %37 = dma.hbm_to_vmem [thread:$0]  %s495_s1, 1536, %s32_s24, [#allocation7], %s430_s29, %s430_s29, %s431_s30  }
  0x18   :  { %420 = dma.done.wait [#allocation4], 128  }
  0x19   :  { %421 = vsyncadd [#allocation4], 4294967168 }
  0x1a   :  { %422 = dma.done.wait [#allocation7], 1536  }
  0x1b   :  { %423 = vsyncadd [#allocation7], 4294965760  ;;  %v432_v0 = vmov 0.0   ;;  %vm433_vm0 = vmmov 0   ;;  %v70_v1 = vld [vmem:[#allocation6 + $0x58] sm:$0xff]  ;;  %v67_v2 = vld [vmem:[#allocation6 + $0x40] sm:$0xff]  ;;  %v230_v14 = vlaneseq }
  0x1c   :  { %315 = vmatprep.subr.mxu1 %v432_v0  ;;  %323 = vmatprep.mubr.msk.f32.mxu1 %vm433_vm0, %v432_v0  ;;  %v64_v3 = vld [vmem:[#allocation6 + $0x28] sm:$0xff]  ;;  %v61_v4 = vld [vmem:[#allocation6 + $0x10] sm:$0xff]  ;;  %v55_v5 = vld [vmem:[#allocation3] sm:$0xff]  ;;  %vm71_vm1 = vcmask 261120   ;;  %vm248_vm2 = vcmask 523264   ;;  %s434_s10 = smov [#allocation8]  }
  0x1d   :  { %139 = vmatprep.mubr.f32.mxu0 %v432_v0  ;;  %316 = vmatpush3.msra.mxu1 %v70_v1  ;;  %v69_v6 = vld [vmem:[#allocation6 + $0x50] sm:$0xff]  ;;  %v68_v7 = vld [vmem:[#allocation6 + $0x48] sm:$0xff]  ;;  %v66_v8 = vld [vmem:[#allocation6 + $0x38] sm:$0xff]  ;;  %v231_v15 = vshrl.u32 %v230_v14, 7  ;;  %s279_s11 = sshll.u32 %s434_s10, 4  ;;  %s435_s12 = smov [#allocation9]   ;;  %s280_s11 = int_to_ptr.vmem [resolvable:$true] %s279_s11 }
  0x1e   :  { %317 = vmatprep.subr.mxu1 %v432_v0  ;;  %99 = vmatprep.subr.mxu0 %v69_v6  ;;  %v65_v9 = vld [vmem:[#allocation6 + $0x30] sm:$0xff]  ;;  %v63_v10 = vld [vmem:[#allocation6 + $0x20] sm:$0xff]  ;;  %v62_v11 = vld [vmem:[#allocation6 + $0x18] sm:$0xff]  ;;  %s289_s13 = sshll.u32 %s435_s12, 4  ;;  %s380_s14 = scalar_lea.vmem %s280_s11, 128  ;;  %s290_s13 = int_to_ptr.vmem [resolvable:$true] %s289_s13 }
  0x1f   :  { %318 = vmatpush3.msra.mxu1 %v67_v2  ;;  %100 = vmatpush1.msra.mxu0 %v68_v7  ;;  %v60_v12 = vld [vmem:[#allocation6 + $0x8] sm:$0xff]  ;;  %v59_v13 = vld [vmem:[#allocation6] sm:$0xff]  ;;  %v240_v16 = vsub.s32 2, %v231_v15  ;;  %v228_v17 = vld [vmem:[%s496_s2] sm:$0x7]  ;;  %v236_v25 = vsub.s32 1, %v231_v15  ;;  %p381_p10 = scmp.ne.s32.totalorder %s280_s11, %s380_s14  ;;  %p385_p11 = scmp.lt.s32.totalorder %s280_s11, %s280_s11 }
  0x20   :  { %319 = vmatprep.subr.mxu1 %v432_v0  ;;  %101 = vmatprep.subr.mxu0 %v66_v8  ;;  %v232_v27 = vsub.s32 0, %v231_v15  ;;  %v309_v36 = vld [vmem:[%s497_s3] ss:$0 sm:$0xff]  ;;  %p386_p12 = scmp.lt.s32.totalorder %s380_s14, %s380_s14 }
  0x21   :  { %320 = vmatpush3.msra.mxu1 %v64_v3  ;;  %102 = vmatpush1.msra.mxu0 %v65_v9  ;;  %v241_v18 = vrot.slane %v228_v17, %v240_v16  ;;  %v237_v28 = vrot.slane %v228_v17, %v236_v25 }
  0x22   :  { %321 = vmatprep.subr.mxu1 %v432_v0  ;;  %103 = vmatprep.subr.mxu0 %v63_v10  ;;  %v233_v31 = vrot.slane %v228_v17, %v232_v27  ;;  %p387_p13 = por %p386_p12, %p385_p11 }
  0x23   :  { %322 = vmatpush3.msra.mxu1 %v61_v4  ;;  %104 = vmatpush1.msra.mxu0 %v62_v11 }
  0x24   :  { %324 = vmatmul.mubr.msk.f32.vlgmr.msra.gmra.mxu1 %vm71_vm1, %v55_v5  ;;  %105 = vmatprep.subr.mxu0 %v60_v12  ;;  %p388_p0 = pnand %p387_p13, %p381_p10 }
  0x25   :  { %106 = vmatpush1.msra.mxu0 %v59_v13 }
  0x26   :  { %307 = vmatmul.mubr.msk.f32.vlgmr.msra.gmra.mxu0 %vm71_vm1, %v55_v5 }
  0xe4   :  { %v212_v19 = vpop.f32.mrf.mxu1 }
  0xe5   :  { %v247_v20 = vadd.f32 %v241_v18, %v212_v19 }
  0xe6   :  { %v325_v21 = vpop.f32.mrf.mxu1  ;;  %v141_v26 = vpop.f32.mrf.mxu0 }
  0xe7   :  { %261 = vmax.xlane.f32.xlu0 %v247_v20  ;;  %v245_v33 = vadd.f32 %v233_v31, %v141_v26 }
  0xe8   :  { %v143_v29 = vpop.f32.mrf.mxu0 }
  0xe9   :  { %v246_v32 = vadd.f32 %v237_v28, %v143_v29  ;;  %249 = vst.msk [vmem:[#allocation8] sm:$0xff] %vm248_vm2, %v245_v33 }
  0xeb   :  { %v250_v34 = vmul.f32 1.442695, %v246_v32 }
 0x170   :  { %v262_v22 = vpop.xlane.xlu0 %261 }
 0x171   :  { %v263_v23 = vsub.f32 %v247_v20, %v262_v22 }
 0x173   :  { %v264_v24 = vmul.f32 1.442695, %v263_v23 }
 0x175   :  { %334 = vpow2.f32 %v264_v24 }
 0x176   :  { %336 = vpow2.f32 %v250_v34 }
 0x182   :  { %v335_v30 = vpop.eup %334 }
 0x183   :  { %266 = vadd.xlane.f32.xlu0 %v335_v30  ;;  %v337_v35 = vpop.eup %336 }
 0x184   :  { %v259_v37 = vadd.f32 %v337_v35, %v309_v36 }
 0x186   :  { %260 = vst.msk [vmem:[#allocation9] sm:$0xff] %vm248_vm2, %v259_v37 }
 0x187   :  { %391 = shalt.err (!%p388_p0)
}
 0x188   :  { %282 = dma.vmem_to_hbm [thread:$0]  %s280_s11, 128, %s498_s4, [#allocation5]  }
 0x189   :  { %s400_s3 = scalar_lea.vmem %s290_s13, 128  ;;  %p405_p2 = scmp.lt.s32.totalorder %s290_s13, %s290_s13 }
 0x18a   :  { %p401_p1 = scmp.ne.s32.totalorder %s290_s13, %s400_s3  ;;  %p406_p3 = scmp.lt.s32.totalorder %s400_s3, %s400_s3 }
 0x18c   :  { %p407_p4 = por %p406_p3, %p405_p2 }
 0x18e   :  { %p408_p5 = pnand %p407_p4, %p401_p1 }
 0x190   :  { %411 = shalt.err (!%p408_p5)
}
 0x191   :  { %292 = dma.vmem_to_hbm [thread:$0]  %s290_s13, 128, %s499_s5, [#allocation10]   ;;  %vm271_vm3 = vcmask 31744  }
 0x20c   :  { %v267_v38 = vpop.xlane.xlu0 %266 }
 0x20d   :  { %338 = vlog2.f32 %v267_v38 }
 0x21a   :  { %v339_v39 = vpop.eup %338 }
 0x21b   :  { %v269_v40 = vmul.f32 0.6931472, %v339_v39 }
 0x21d   :  { %v270_v41 = vsub.f32 %v263_v23, %v269_v40 }
 0x21f   :  { %272 = vst.msk [vmem:[%s500_s6] sm:$0xff] %vm271_vm3, %v270_v41 }
 0x220   :  { %424 = dma.done.wait [#allocation5], 128  }
 0x221   :  { %425 = vsyncadd [#allocation5], 4294967168 }
 0x222   :  { %426 = dma.done.wait [#allocation10], 128  }
 0x223   :  { %427 = vsyncadd [#allocation10], 4294967168 }
 0x224   :  { %303 = vsyncpa [#allocation4], 1 }
 0x225   :  { %304 = vsyncpa [#allocation7], 1 }
 0x226   :  { %305 = vsyncpa [#allocation5], 1 }
 0x227   :  { %306 = vsyncpa [#allocation10], 1 }

</bundles_post_ra>
